<compile_context>
chip_gen: v7x
topology: tpu7x:2x2x1
jax: 0.10.0
libtpu: 0.0.40
codegen_flags: <defaults>
</compile_context>

<pallas_src>
import functools

import numpy as np
import jax
import jax.numpy as jnp
from jax.experimental import pallas as pl
from jax.experimental.pallas import tpu as pltpu


_INV_SQRT2 = 0.7071067811865476


def _round_up(n: int, m: int) -> int:
    return ((n + m - 1) // m) * m


def _vmem_capacity_bytes() -> int:
    """Per-core VMEM capacity, generation-aware, with conservative fallback."""
    try:
        cap = int(getattr(pltpu.get_tpu_info(), "vmem_capacity_bytes", 0) or 0)
        if cap > 0:
            return cap
    except Exception:
        pass
    try:
        kind = jax.devices()[0].device_kind.lower()
    except Exception:
        kind = ""
    if "v7" in kind:
        return 64 * 1024 * 1024
    if ("v5" in kind) or ("v6" in kind):
        return 128 * 1024 * 1024
    return 64 * 1024 * 1024  # unknown: be conservative


def _erf_approx(z):
    """Abramowitz & Stegun 7.1.26 erf approximation, |err| <= 1.5e-7 (f32)."""
    p = 0.3275911
    a1, a2, a3, a4, a5 = (0.254829592, -0.284496736, 1.421413741,
                          -1.453152027, 1.061405429)
    sign = jnp.where(z >= 0.0, 1.0, -1.0)
    az = jnp.abs(z)
    d = 1.0 + p * az
    # EUP approximate reciprocal + one Newton step: keeps the divide off the
    # VALU critical path while staying effectively f32-exact.
    t = pl.reciprocal(d, approx=True)
    t = t * (2.0 - d * t)
    poly = ((((a5 * t + a4) * t + a3) * t + a2) * t + a1) * t
    return sign * (1.0 - poly * jnp.exp(-az * az))


def _gelu_erf(h):
    """0.5 * x * (1 + erf(x / sqrt(2))) — matches the PyTorch GELU in the spec."""
    return 0.5 * h * (1.0 + _erf_approx(h * _INV_SQRT2))


# ----------------------------------------------------------------------------
# Kernels
# ----------------------------------------------------------------------------
def _ffn_kernel_resident(x_ref, w1_ref, w2_ref, o_ref, *, bf16_matmul):
    """Weights fully VMEM-resident; one row tile per grid step."""
    x = x_ref[...]
    w1 = w1_ref[...]
    w2 = w2_ref[...]
    if bf16_matmul:
        x = x.astype(jnp.bfloat16)
        w1 = w1.astype(jnp.bfloat16)
        w2 = w2.astype(jnp.bfloat16)
    h = jnp.dot(x, w1, preferred_element_type=jnp.float32)
    h = _gelu_erf(h).astype(w2.dtype)
    o_ref[...] = jnp.dot(h, w2,
                         preferred_element_type=jnp.float32).astype(o_ref.dtype)


def _ffn_kernel_streamed(x_ref, w1_ref, w2_ref, o_ref, acc_ref, *, bf16_matmul):
    """d_ff streamed on the trailing reduction axis; f32 accumulator in VMEM."""
    j = pl.program_id(1)

    @pl.when(j == 0)
    def _():
        acc_ref[...] = jnp.zeros_like(acc_ref)

    x = x_ref[...]
    w1 = w1_ref[...]
    w2 = w2_ref[...]
    if bf16_matmul:
        x = x.astype(jnp.bfloat16)
        w1 = w1.astype(jnp.bfloat16)
        w2 = w2.astype(jnp.bfloat16)
    h = jnp.dot(x, w1, preferred_element_type=jnp.float32)
    h = _gelu_erf(h).astype(w2.dtype)
    acc_ref[...] += jnp.dot(h, w2, preferred_element_type=jnp.float32)

    @pl.when(j == pl.num_programs(1) - 1)
    def _():
        o_ref[...] = acc_ref[...].astype(o_ref.dtype)


# ----------------------------------------------------------------------------
# Wrapper: padding, tile selection, VMEM budget, pallas_call
# ----------------------------------------------------------------------------
def ffn_forward(x, w1, w2, *, tm=None, tf=None, bf16_matmul=False,
                interpret=False):
    """y = gelu_exact(x @ w1) @ w2.

    x  : (..., d_model)   (native dtype; bf16 or f32 — no host-side casts)
    w1 : (d_model, d_ff)  (== torch nn.Linear.weight.T of self.w1)
    w2 : (d_ff, d_model)  (== torch nn.Linear.weight.T of self.w2)
    bf16_matmul: cast MXU operands to bf16 (f32 accumulation kept) — useful on
                 v5e where f32 matmul runs well below peak.
    """
    orig_shape = x.shape
    d_model = orig_shape[-1]
    d_ff = w1.shape[1]
    assert w1.shape == (d_model, d_ff), w1.shape
    assert w2.shape == (d_ff, d_model), w2.shape

    M = int(np.prod(orig_shape[:-1])) if len(orig_shape) > 1 else 1
    x2 = x.reshape(M, d_model)

    x_item = jnp.dtype(x.dtype).itemsize
    w1_item = jnp.dtype(w1.dtype).itemsize
    w2_item = jnp.dtype(w2.dtype).itemsize
    out_item = x_item

    # --- lane-dense last dims: pad d_model / d_ff up to multiples of 128 -----
    # (zero rows/cols of the weights contribute nothing and gelu(0) == 0, so
    # padding is exact; padded output columns are sliced off below.)
    Dp = _round_up(d_model, 128)
    Fp = _round_up(d_ff, 128)
    if Dp != d_model:
        x2 = jnp.pad(x2, ((0, 0), (0, Dp - d_model)))
        w1 = jnp.pad(w1, ((0, Dp - d_model), (0, 0)))
        w2 = jnp.pad(w2, ((0, 0), (0, Dp - d_model)))
    if Fp != d_ff:
        w1 = jnp.pad(w1, ((0, 0), (0, Fp - d_ff)))
        w2 = jnp.pad(w2, ((0, Fp - d_ff), (0, 0)))

    # --- row tile alignment follows dtype sublane packing ---------------------
    row_align = {4: 8, 2: 16, 1: 32}.get(x_item, 8)
    m_ceiling = max(_round_up(M, row_align), row_align)

    cap = _vmem_capacity_bytes()
    budget = int(min(cap * 0.85, 112 * 1024 * 1024))   # headroom (esp. v7x 64 MiB)

    w_bytes = Dp * Fp * w1_item + Fp * Dp * w2_item

    if tm is not None:
        tm_cands = [min(max(_round_up(int(tm), row_align), row_align), m_ceiling)]
    else:
        tm_cands = [c for c in (1024, 768, 512, 384, 256, 128, 64, 32, 16, 8)
                    if c % row_align == 0 and c <= m_ceiling]
        if m_ceiling not in tm_cands:
            tm_cands.append(m_ceiling)
        tm_cands = sorted(set(tm_cands), reverse=True)

    # ---------------- Mode A: fully VMEM-resident weights ---------------------
    resident_tm = None
    if tf is None:
        for c in tm_cands:
            need = (2 * w_bytes                      # w1/w2 (double-buffer slots)
                    + 2 * c * Dp * x_item            # x row tile, double-buffered
                    + 2 * c * Dp * out_item          # out row tile, double-buffered
                    + c * Fp * 4                     # f32 hidden activations
                    + c * Dp * 4)                    # f32 result before downcast
            if int(need * 1.15) <= budget:
                resident_tm = c
                break

    if resident_tm is not None:
        tm_eff = resident_tm
        Mp = _round_up(M, tm_eff)
        if Mp != M:
            # zero rows are exact: gelu(0 @ w1) @ w2 == 0, sliced off afterwards.
            x2 = jnp.pad(x2, ((0, Mp - M), (0, 0)))
        grid = (Mp // tm_eff,)

        cost = pl.CostEstimate(
            flops=4 * Mp * Dp * Fp,                 # two matmuls
            transcendentals=Mp * Fp,                # one exp per gelu element
            bytes_accessed=(Mp * Dp * (x_item + out_item)     # x read + y write
                            + Dp * Fp * w1_item + Fp * Dp * w2_item),  # once
        )

        out = pl.pallas_call(
            functools.partial(_ffn_kernel_resident, bf16_matmul=bf16_matmul),
            out_shape=jax.ShapeDtypeStruct((Mp, Dp), x.dtype),
            grid=grid,
            in_specs=[
                pl.BlockSpec((tm_eff, Dp), lambda i: (i, 0)),   # x rows
                pl.BlockSpec((Dp, Fp), lambda i: (0, 0)),       # w1: resident
                pl.BlockSpec((Fp, Dp), lambda i: (0, 0)),       # w2: resident
            ],
            out_specs=pl.BlockSpec((tm_eff, Dp), lambda i: (i, 0)),
            compiler_params=pltpu.CompilerParams(
                dimension_semantics=("parallel",),
                vmem_limit_bytes=budget,
            ),
            cost_estimate=cost,
            interpret=interpret,
        )(x2, w1, w2)

    else:
        # -------------- Mode B: weight slabs streamed over d_ff ---------------
        if tf is None:
            tf_eff = 128
            for cand in (512, 256, 128):
                if Fp % cand == 0:
                    tf_eff = cand
                    break
        else:
            tf_eff = int(tf)
        assert Fp % tf_eff == 0, (Fp, tf_eff)

        def _streamed_need(c):
            return (2 * c * Dp * x_item                             # x tile
                    + 2 * (Dp * tf_eff * w1_item + tf_eff * Dp * w2_item)  # slabs
                    + 2 * c * Dp * out_item                          # out tile
                    + c * Dp * 4                                     # f32 acc
                    + c * tf_eff * 4)                                # f32 hidden

        tm_eff = tm_cands[-1]
        for c in tm_cands:
            if int(_streamed_need(c) * 1.15) <= budget:
                tm_eff = c
                break

        Mp = _round_up(M, tm_eff)
        if Mp != M:
            x2 = jnp.pad(x2, ((0, Mp - M), (0, 0)))
        ni, nj = Mp // tm_eff, Fp // tf_eff
        grid = (ni, nj)

        def _serp(i, j):
            # Serpentine d_ff sweep: the last slab of row-tile i equals the
            # first slab of row-tile i+1, so its re-DMA is skipped.
            return jnp.where((i % 2) == 0, j, nj - 1 - j)

        cost = pl.CostEstimate(
            flops=4 * Mp * Dp * Fp,
            transcendentals=Mp * Fp,
            bytes_accessed=(Mp * Dp * (x_item + out_item)
                            + ni * (Dp * Fp * w1_item + Fp * Dp * w2_item)),
        )

        out = pl.pallas_call(
            functools.partial(_ffn_kernel_streamed, bf16_matmul=bf16_matmul),
            out_shape=jax.ShapeDtypeStruct((Mp, Dp), x.dtype),
            grid=grid,
            in_specs=[
                pl.BlockSpec((tm_eff, Dp), lambda i, j: (i, 0)),           # x rows
                pl.BlockSpec((Dp, tf_eff), lambda i, j: (0, _serp(i, j))), # w1 slab
                pl.BlockSpec((tf_eff, Dp), lambda i, j: (_serp(i, j), 0)), # w2 slab
            ],
            out_specs=pl.BlockSpec((tm_eff, Dp), lambda i, j: (i, 0)),
            scratch_shapes=[pltpu.VMEM((tm_eff, Dp), jnp.float32)],
            compiler_params=pltpu.CompilerParams(
                dimension_semantics=("parallel", "arbitrary"),
                vmem_limit_bytes=budget,
            ),
            cost_estimate=cost,
            interpret=interpret,
        )(x2, w1, w2)

    return out[:M, :d_model].reshape(orig_shape)


# ----------------------------------------------------------------------------
# Demo
# ----------------------------------------------------------------------------
if __name__ == "__main__":
    key = jax.random.PRNGKey(0)
    B, S, d_model, d_ff = 2, 8, 32, 128

    k1, k2, k3 = jax.random.split(key, 3)
    x = jax.random.normal(k1, (B, S, d_model), dtype=jnp.float32)
    # Weights in matmul layout (torch nn.Linear weight, transposed), init-scaled.
    w1 = jax.random.normal(k2, (d_model, d_ff), dtype=jnp.float32) / np.sqrt(d_model)
    w2 = jax.random.normal(k3, (d_ff, d_model), dtype=jnp.float32) / np.sqrt(d_ff)

    y = ffn_forward(x, w1, w2)
    y = jax.block_until_ready(y)

    # Reference: exact-erf GELU FFN in plain JAX (highest-precision matmuls).
    h_ref = jnp.dot(x, w1, precision=jax.lax.Precision.HIGHEST)
    h_ref = 0.5 * h_ref * (1.0 + jax.scipy.special.erf(h_ref * _INV_SQRT2))
    y_ref = jnp.dot(h_ref, w2, precision=jax.lax.Precision.HIGHEST)

    max_err = float(jnp.max(jnp.abs(y - y_ref)))
    assert max_err < 1e-2, f"FFN kernel mismatch: max abs err {max_err}"

    print("KERNEL_OK")
</pallas_src>

<mosaic_0001>
module attributes {stable_mosaic.version = 11 : i64} {
  func.func @_ffn_kernel_resident(%arg0: i32, %arg1: memref<16x128xf32, #tpu.memory_space<vmem>>, %arg2: memref<128x128xf32, #tpu.memory_space<vmem>>, %arg3: memref<128x128xf32, #tpu.memory_space<vmem>>, %arg4: memref<16x128xf32, #tpu.memory_space<vmem>>) attributes {dimension_semantics = [#tpu.dimension_semantics<parallel>], iteration_bounds = array<i64: 1>, scalar_prefetch = 0 : i64, scratch_operands = 0 : i64, tpu.core_type = #tpu.core_type<tc>, window_params = [{transform_indices = @transform_0, window_bounds = array<i64: 16, 128>}, {pipeline_mode = #tpu.pipeline_mode<synchronous>, transform_indices = @transform_1, window_bounds = array<i64: 128, 128>}, {pipeline_mode = #tpu.pipeline_mode<synchronous>, transform_indices = @transform_2, window_bounds = array<i64: 128, 128>}, {transform_indices = @transform_3, window_bounds = array<i64: 16, 128>}]} {
    %c0 = arith.constant 0 : index
    %c0_0 = arith.constant 0 : index
    %0 = vector.load %arg1[%c0, %c0_0] : memref<16x128xf32, #tpu.memory_space<vmem>>, vector<16x128xf32>
    %c0_1 = arith.constant 0 : index
    %c0_2 = arith.constant 0 : index
    %1 = vector.load %arg2[%c0_1, %c0_2] : memref<128x128xf32, #tpu.memory_space<vmem>>, vector<128x128xf32>
    %c0_3 = arith.constant 0 : index
    %c0_4 = arith.constant 0 : index
    %2 = vector.load %arg3[%c0_3, %c0_4] : memref<128x128xf32, #tpu.memory_space<vmem>>, vector<128x128xf32>
    %cst = arith.constant dense<0.000000e+00> : vector<16x128xf32>
    %3 = tpu.matmul %0, %1, %cst {dimension_numbers = #tpu.dot_dimension_numbers<[1], [0], [0], [1], [0, 0, 1, 1], [], []>} : vector<16x128xf32>, vector<128x128xf32>, vector<16x128xf32> -> vector<16x128xf32>
    %cst_5 = arith.constant 5.000000e-01 : f32
    %4 = vector.broadcast %cst_5 : f32 to vector<16x128xf32>
    %5 = arith.mulf %4, %3 : vector<16x128xf32>
    %cst_6 = arith.constant 0.707106769 : f32
    %6 = vector.broadcast %cst_6 : f32 to vector<16x128xf32>
    %7 = arith.mulf %3, %6 : vector<16x128xf32>
    %cst_7 = arith.constant 0.000000e+00 : f32
    %8 = vector.broadcast %cst_7 : f32 to vector<16x128xf32>
    %9 = arith.cmpf oge, %7, %8 : vector<16x128xf32>
    %cst_8 = arith.constant 1.000000e+00 : f32
    %cst_9 = arith.constant -1.000000e+00 : f32
    %10 = vector.broadcast %cst_8 : f32 to vector<16x128xf32>
    %11 = vector.broadcast %cst_9 : f32 to vector<16x128xf32>
    %12 = arith.select %9, %10, %11 : vector<16x128xi1>, vector<16x128xf32>
    %13 = math.absf %7 : vector<16x128xf32>
    %cst_10 = arith.constant 0.327591091 : f32
    %14 = vector.broadcast %cst_10 : f32 to vector<16x128xf32>
    %15 = arith.mulf %14, %13 : vector<16x128xf32>
    %cst_11 = arith.constant 1.000000e+00 : f32
    %16 = vector.broadcast %cst_11 : f32 to vector<16x128xf32>
    %17 = arith.addf %16, %15 : vector<16x128xf32>
    %18 = tpu.reciprocal %17 {approx = true} : vector<16x128xf32> -> vector<16x128xf32>
    %19 = arith.mulf %17, %18 : vector<16x128xf32>
    %cst_12 = arith.constant 2.000000e+00 : f32
    %20 = vector.broadcast %cst_12 : f32 to vector<16x128xf32>
    %21 = arith.subf %20, %19 : vector<16x128xf32>
    %22 = arith.mulf %18, %21 : vector<16x128xf32>
    %cst_13 = arith.constant 1.06140542 : f32
    %23 = vector.broadcast %cst_13 : f32 to vector<16x128xf32>
    %24 = arith.mulf %23, %22 : vector<16x128xf32>
    %cst_14 = arith.constant -1.45315206 : f32
    %25 = vector.broadcast %cst_14 : f32 to vector<16x128xf32>
    %26 = arith.addf %24, %25 : vector<16x128xf32>
    %27 = arith.mulf %26, %22 : vector<16x128xf32>
    %cst_15 = arith.constant 1.42141378 : f32
    %28 = vector.broadcast %cst_15 : f32 to vector<16x128xf32>
    %29 = arith.addf %27, %28 : vector<16x128xf32>
    %30 = arith.mulf %29, %22 : vector<16x128xf32>
    %cst_16 = arith.constant -0.284496725 : f32
    %31 = vector.broadcast %cst_16 : f32 to vector<16x128xf32>
    %32 = arith.addf %30, %31 : vector<16x128xf32>
    %33 = arith.mulf %32, %22 : vector<16x128xf32>
    %cst_17 = arith.constant 0.254829586 : f32
    %34 = vector.broadcast %cst_17 : f32 to vector<16x128xf32>
    %35 = arith.addf %33, %34 : vector<16x128xf32>
    %36 = arith.mulf %35, %22 : vector<16x128xf32>
    %cst_18 = arith.constant 0.000000e+00 : f32
    %37 = vector.broadcast %cst_18 : f32 to vector<16x128xf32>
    %38 = arith.subf %37, %13 : vector<16x128xf32>
    %39 = arith.mulf %38, %13 : vector<16x128xf32>
    %40 = math.exp %39 : vector<16x128xf32>
    %41 = arith.mulf %36, %40 : vector<16x128xf32>
    %cst_19 = arith.constant 1.000000e+00 : f32
    %42 = vector.broadcast %cst_19 : f32 to vector<16x128xf32>
    %43 = arith.subf %42, %41 : vector<16x128xf32>
    %44 = arith.mulf %12, %43 : vector<16x128xf32>
    %cst_20 = arith.constant 1.000000e+00 : f32
    %45 = vector.broadcast %cst_20 : f32 to vector<16x128xf32>
    %46 = arith.addf %45, %44 : vector<16x128xf32>
    %47 = arith.mulf %5, %46 : vector<16x128xf32>
    %cst_21 = arith.constant dense<0.000000e+00> : vector<16x128xf32>
    %48 = tpu.matmul %47, %2, %cst_21 {dimension_numbers = #tpu.dot_dimension_numbers<[1], [0], [0], [1], [0, 0, 1, 1], [], []>} : vector<16x128xf32>, vector<128x128xf32>, vector<16x128xf32> -> vector<16x128xf32>
    %c0_22 = arith.constant 0 : index
    %c0_23 = arith.constant 0 : index
    %49 = vector.load %arg4[%c0_22, %c0_23] : memref<16x128xf32, #tpu.memory_space<vmem>>, vector<16x128xf32>
    tpu.vector_store %arg4[%c0_22, %c0_23], %48 {strides = array<i32>} : memref<16x128xf32, #tpu.memory_space<vmem>>, vector<16x128xf32>,
    return
  }
  func.func @transform_0(%arg0: i32) -> (i32, i32) {
    %c0_i32 = arith.constant 0 : i32
    %c0_i32_0 = arith.constant 0 : i32
    return %arg0, %c0_i32 : i32, i32
  }
  func.func @transform_1(%arg0: i32) -> (i32, i32) {
    %c0_i32 = arith.constant 0 : i32
    %c0_i32_0 = arith.constant 0 : i32
    %c0_i32_1 = arith.constant 0 : i32
    return %c0_i32, %c0_i32_0 : i32, i32
  }
  func.func @transform_2(%arg0: i32) -> (i32, i32) {
    %c0_i32 = arith.constant 0 : i32
    %c0_i32_0 = arith.constant 0 : i32
    %c0_i32_1 = arith.constant 0 : i32
    return %c0_i32, %c0_i32_0 : i32, i32
  }
  func.func @transform_3(%arg0: i32) -> (i32, i32) {
    %c0_i32 = arith.constant 0 : i32
    %c0_i32_0 = arith.constant 0 : i32
    return %arg0, %c0_i32 : i32, i32
  }
}

</mosaic_0001>

<bundles_post_ra>
// kernel: tpu_custom_call.1
= control target key start
LH: loop header
LB: loop body
LE: loop exit
PB: predicated region body
PF: predicated region fallthrough
CT: control target
= control target key end

     0   :  { %8 = vsyncpa [#allocation3], 0  ;;  %s691_s0 = inlined_call_operand.hbm [shape: f32[16,128], index: 0, kind: input, shape index: {}]   ;;  %s692_s1 = inlined_call_operand.hbm [shape: f32[128,128], index: 1, kind: input, shape index: {}]   ;;  %s693_s2 = inlined_call_operand.hbm [shape: f32[128,128], index: 2, kind: input, shape index: {}]   ;;  %s694_s3 = inlined_call_operand.hbm [shape: f32[16,128], index: 3, kind: output, shape index: {}]  }
   0x1   :  { %9 = vsyncpa [#allocation6], 0 }
   0x2   :  { %10 = vsyncpa [#allocation4], 0  ;;  %s597_s12 = smov [#allocation5]   ;;  %s598_s14 = smov [#allocation2]  }
   0x3   :  { %s28_s13 = sshll.u32 %s597_s12, 4  ;;  %s16_s15 = sshll.u32 %s598_s14, 4  ;;  %s29_s13 = int_to_ptr.vmem [resolvable:$true] %s28_s13  ;;  %s624_s15 = int_to_ptr.vmem [resolvable:$true] %s16_s15 }
   0x4   :  { %s503_s18 = scalar_lea.hbm %s692_s1, 2048 }
   0x5   :  { %p504_p0 = scmp.ne.s32.totalorder %s692_s1, %s503_s18  ;;  %p507_p1 = scmp.lt.u32.totalorder %s503_s18, %s692_s1 }
   0x7   :  { %p509_p2 = pnand %p507_p1, %p504_p0 }
   0x9   :  { %512 = shalt.err (!%p509_p2)
}
   0xa   :  { %s513_s23 = scalar_lea.vmem %s29_s13, 2048  ;;  %p518_p4 = scmp.lt.s32.totalorder %s29_s13, %s29_s13 }
   0xb   :  { %p514_p3 = scmp.ne.s32.totalorder %s29_s13, %s513_s23  ;;  %p519_p5 = scmp.lt.s32.totalorder %s513_s23, %s513_s23 }
   0xd   :  { %p520_p6 = por %p519_p5, %p518_p4 }
   0xf   :  { %p521_p7 = pnand %p520_p6, %p514_p3 }
  0x11   :  { %524 = shalt.err (!%p521_p7)
}
  0x12   :  { %s599_s24 = smov 128   ;;  %s600_s25 = smov 8  }
  0x13   :  { %34 = dma.hbm_to_vmem [thread:$0]  %s692_s1, 2048, %s29_s13, [#allocation6], %s599_s24, %s599_s24, %s600_s25  }
  0x14   :  { %s525_s30 = scalar_lea.hbm %s691_s0, 256 }
  0x15   :  { %p526_p8 = scmp.ne.s32.totalorder %s691_s0, %s525_s30  ;;  %p529_p9 = scmp.lt.u32.totalorder %s525_s30, %s691_s0 }
  0x17   :  { %p531_p10 = pnand %p529_p9, %p526_p8 }
  0x19   :  { %534 = shalt.err (!%p531_p10)
}
  0x1a   :  { %s535_s8 = scalar_lea.vmem %s624_s15, 256  ;;  %p540_p12 = scmp.lt.s32.totalorder %s624_s15, %s624_s15 }
  0x1b   :  { %p536_p11 = scmp.ne.s32.totalorder %s624_s15, %s535_s8  ;;  %p541_p13 = scmp.lt.s32.totalorder %s535_s8, %s535_s8 }
  0x1d   :  { %p542_p0 = por %p541_p13, %p540_p12 }
  0x1f   :  { %p543_p1 = pnand %p542_p0, %p536_p11 }
  0x21   :  { %546 = shalt.err (!%p543_p1)
}
  0x22   :  { %22 = dma.hbm_to_vmem [thread:$0]  %s691_s0, 256, %s624_s15, [#allocation3], %s599_s24, %s599_s24, %s600_s25  }
  0x23   :  { %s601_s10 = smov [#allocation7]   ;;  %s547_s14 = scalar_lea.hbm %s693_s2, 2048 }
  0x24   :  { %s40_s11 = sshll.u32 %s601_s10, 4  ;;  %p548_p2 = scmp.ne.s32.totalorder %s693_s2, %s547_s14  ;;  %s41_s11 = int_to_ptr.vmem [resolvable:$true] %s40_s11 }
  0x25   :  { %p551_p3 = scmp.lt.u32.totalorder %s547_s14, %s693_s2 }
  0x27   :  { %p553_p4 = pnand %p551_p3, %p548_p2 }
  0x29   :  { %556 = shalt.err (!%p553_p4)
}
  0x2a   :  { %s557_s20 = scalar_lea.vmem %s41_s11, 2048  ;;  %p562_p6 = scmp.lt.s32.totalorder %s41_s11, %s41_s11 }
  0x2b   :  { %p558_p5 = scmp.ne.s32.totalorder %s41_s11, %s557_s20  ;;  %p563_p7 = scmp.lt.s32.totalorder %s557_s20, %s557_s20 }
  0x2d   :  { %p564_p8 = por %p563_p7, %p562_p6 }
  0x2f   :  { %p565_p9 = pnand %p564_p8, %p558_p5 }
  0x31   :  { %568 = shalt.err (!%p565_p9)
}
  0x32   :  { %46 = dma.hbm_to_vmem [thread:$0]  %s693_s2, 2048, %s41_s11, [#allocation6], %s599_s24, %s599_s24, %s600_s25  }
  0x33   :  { %591 = dma.done.wait [#allocation3], 256  }
  0x34   :  { %592 = vsyncadd [#allocation3], 4294967040 }
  0x35   :  { %593 = dma.done.wait [#allocation6], 4096  }
  0x36   :  { %594 = vsyncadd [#allocation6], 4294963200  ;;  %v58_v0 = vld [vmem:[#allocation5] sm:$0xff]  ;;  %v59_v1 = vld [vmem:[#allocation5 + $0x8] sm:$0xff]  ;;  %s603_s2 = smov [#allocation8]  }
  0x37   :  { %v60_v2 = vld [vmem:[#allocation5 + $0x10] sm:$0xff]  ;;  %v424_v3 = vpack.c.bf16 %v59_v1, %v58_v0  ;;  %v61_v4 = vld [vmem:[#allocation5 + $0x18] sm:$0xff]  ;;  %v62_v6 = vld [vmem:[#allocation5 + $0x20] sm:$0xff]  ;;  %s305_s21 = sshll.u32 %s603_s2, 4  ;;  %s306_s21 = int_to_ptr.vmem [resolvable:$true] %s305_s21 }
  0x38   :  { %v428_v5 = vpack.c.bf16 %v61_v4, %v60_v2  ;;  %v63_v7 = vld [vmem:[#allocation5 + $0x28] sm:$0xff]  ;;  %v56_v9 = vld [vmem:[#allocation2] sm:$0xff]  ;;  %v65_v11 = vld [vmem:[#allocation5 + $0x38] sm:$0xff]  ;;  %s569_s22 = scalar_lea.vmem %s306_s21, 256  ;;  %p574_p11 = scmp.lt.s32.totalorder %s306_s21, %s306_s21 }
  0x39   :  { %425 = vmatprep.subr.bf16.mxu0 %v424_v3  ;;  %v432_v8 = vpack.c.bf16 %v63_v7, %v62_v6  ;;  %v64_v10 = vld [vmem:[#allocation5 + $0x30] sm:$0xff]  ;;  %386 = vmatprep.mubr.f32.mxu0 %v56_v9  ;;  %v66_v13 = vld [vmem:[#allocation5 + $0x40] sm:$0xff]  ;;  %v67_v14 = vld [vmem:[#allocation5 + $0x48] sm:$0xff]  ;;  %p570_p10 = scmp.ne.s32.totalorder %s306_s21, %s569_s22  ;;  %p575_p12 = scmp.lt.s32.totalorder %s569_s22, %s569_s22 }
  0x3a   :  { %427 = vmatpush3.bf16.msra.mxu0 %v424_v3  ;;  %v436_v12 = vpack.c.bf16 %v65_v11, %v64_v10  ;;  %v440_v15 = vpack.c.bf16 %v67_v14, %v66_v13  ;;  %v68_v16 = vld [vmem:[#allocation5 + $0x50] sm:$0xff]  ;;  %v69_v17 = vld [vmem:[#allocation5 + $0x58] sm:$0xff]  ;;  %v70_v19 = vld [vmem:[#allocation5 + $0x60] sm:$0xff] }
  0x3b   :  { %429 = vmatprep.subr.bf16.mxu0 %v428_v5  ;;  %v444_v18 = vpack.c.bf16 %v69_v17, %v68_v16  ;;  %v71_v20 = vld [vmem:[#allocation5 + $0x68] sm:$0xff]  ;;  %v72_v22 = vld [vmem:[#allocation5 + $0x70] sm:$0xff]  ;;  %v73_v23 = vld [vmem:[#allocation5 + $0x78] sm:$0xff]  ;;  %p576_p13 = por %p575_p12, %p574_p11 }
  0x3c   :  { %v448_v21 = vpack.c.bf16 %v71_v20, %v70_v19  ;;  %v452_v24 = vpack.c.bf16 %v73_v23, %v72_v22  ;;  %v57_v25 = vld [vmem:[#allocation2 + $0x8] sm:$0xff]  ;;  %v74_v26 = vld [vmem:[#allocation7] sm:$0xff]  ;;  %v75_v27 = vld [vmem:[#allocation7 + $0x8] sm:$0xff] }
  0x3d   :  { %v456_v28 = vpack.c.bf16 %v75_v27, %v74_v26  ;;  %v76_v29 = vld [vmem:[#allocation7 + $0x10] sm:$0xff]  ;;  %v77_v30 = vld [vmem:[#allocation7 + $0x18] sm:$0xff]  ;;  %v78_v32 = vld [vmem:[#allocation7 + $0x20] sm:$0xff]  ;;  %p577_p0 = pnand %p576_p13, %p570_p10 }
  0x3e   :  { %431 = vmatpush3.bf16.msra.mxu0 %v428_v5  ;;  %v460_v31 = vpack.c.bf16 %v77_v30, %v76_v29  ;;  %v79_v33 = vld [vmem:[#allocation7 + $0x28] sm:$0xff]  ;;  %v80_v35 = vld [vmem:[#allocation7 + $0x30] sm:$0xff]  ;;  %v81_v36 = vld [vmem:[#allocation7 + $0x38] sm:$0xff] }
  0x3f   :  { %433 = vmatprep.subr.bf16.mxu0 %v432_v8  ;;  %457 = vmatprep.subr.bf16.mxu1 %v456_v28  ;;  %v464_v34 = vpack.c.bf16 %v79_v33, %v78_v32  ;;  %v468_v37 = vpack.c.bf16 %v81_v36, %v80_v35  ;;  %v82_v38 = vld [vmem:[#allocation7 + $0x40] sm:$0xff]  ;;  %v83_v39 = vld [vmem:[#allocation7 + $0x48] sm:$0xff]  ;;  %v84_v41 = vld [vmem:[#allocation7 + $0x50] sm:$0xff]  ;;  %v602_v33 = vmov -1.0  }
  0x40   :  { %459 = vmatpush3.bf16.msra.mxu1 %v456_v28  ;;  %v472_v40 = vpack.c.bf16 %v83_v39, %v82_v38  ;;  %v85_v42 = vld [vmem:[#allocation7 + $0x58] sm:$0xff]  ;;  %v86_v44 = vld [vmem:[#allocation7 + $0x60] sm:$0xff]  ;;  %v87_v45 = vld [vmem:[#allocation7 + $0x68] sm:$0xff] }
  0x41   :  { %461 = vmatprep.subr.bf16.mxu1 %v460_v31  ;;  %v476_v43 = vpack.c.bf16 %v85_v42, %v84_v41  ;;  %v480_v46 = vpack.c.bf16 %v87_v45, %v86_v44  ;;  %v88_v47 = vld [vmem:[#allocation7 + $0x70] sm:$0xff]  ;;  %v89_v48 = vld [vmem:[#allocation7 + $0x78] sm:$0xff] }
  0x42   :  { %435 = vmatpush3.bf16.msra.mxu0 %v432_v8  ;;  %v484_v49 = vpack.c.bf16 %v89_v48, %v88_v47 }
  0x43   :  { %437 = vmatprep.subr.bf16.mxu0 %v436_v12 }
  0x44   :  { %463 = vmatpush3.bf16.msra.mxu1 %v460_v31 }
  0x45   :  { %465 = vmatprep.subr.bf16.mxu1 %v464_v34 }
  0x46   :  { %439 = vmatpush3.bf16.msra.mxu0 %v436_v12 }
  0x47   :  { %441 = vmatprep.subr.bf16.mxu0 %v440_v15 }
  0x48   :  { %467 = vmatpush3.bf16.msra.mxu1 %v464_v34 }
  0x49   :  { %469 = vmatprep.subr.bf16.mxu1 %v468_v37 }
  0x4a   :  { %443 = vmatpush3.bf16.msra.mxu0 %v440_v15 }
  0x4b   :  { %445 = vmatprep.subr.bf16.mxu0 %v444_v18 }
  0x4c   :  { %471 = vmatpush3.bf16.msra.mxu1 %v468_v37 }
  0x4d   :  { %473 = vmatprep.subr.bf16.mxu1 %v472_v40 }
  0x4e   :  { %447 = vmatpush3.bf16.msra.mxu0 %v444_v18 }
  0x4f   :  { %449 = vmatprep.subr.bf16.mxu0 %v448_v21 }
  0x50   :  { %475 = vmatpush3.bf16.msra.mxu1 %v472_v40 }
  0x51   :  { %477 = vmatprep.subr.bf16.mxu1 %v476_v43 }
  0x52   :  { %451 = vmatpush3.bf16.msra.mxu0 %v448_v21 }
  0x53   :  { %453 = vmatprep.subr.bf16.mxu0 %v452_v24 }
  0x54   :  { %479 = vmatpush3.bf16.msra.mxu1 %v476_v43 }
  0x55   :  { %481 = vmatprep.subr.bf16.mxu1 %v480_v46 }
  0x56   :  { %455 = vmatpush3.bf16.msra.mxu0 %v452_v24 }
  0x58   :  { %483 = vmatpush3.bf16.msra.mxu1 %v480_v46 }
  0x59   :  { %387 = vmatmul.mubr.f32.vlgmr.msra.gmra.mrb[0].mxu0 %v57_v25  ;;  %485 = vmatprep.subr.bf16.mxu1 %v484_v49 }
  0x5c   :  { %487 = vmatpush3.bf16.msra.mxu1 %v484_v49 }
 0x12c   :  { %v388_v50 = vpop.f32.mrb[0].mxu0 }
 0x12d   :  { %v168_v51 = vmul.f32 0.70710677, %v388_v50  ;;  %v156_v52 = vpop.f32.mrb[1].mxu0  ;;  %v166_v42 = vmul.f32 0.5, %v388_v50 }
 0x12e   :  { %v167_v53 = vmul.f32 0.70710677, %v156_v52  ;;  %v165_v40 = vmul.f32 0.5, %v156_v52 }
 0x12f   :  { %v174_v54 = vand.u32 2147483647, %v168_v51  ;;  %vm170_vm0 = vcmp.ge.f32.partialorder %v168_v51, 0.0 }
 0x130   :  { %v173_v55 = vand.u32 2147483647, %v167_v53  ;;  %vm169_vm1 = vcmp.ge.f32.partialorder %v167_v53, 0.0  ;;  %v172_v34 = vsel %vm170_vm0, 1.0, %v602_v33 }
 0x131   :  { %v176_v56 = vmul.f32 0.3275911, %v174_v54  ;;  %v206_v63 = vsub.f32 0.0, %v174_v54  ;;  %v171_v37 = vsel %vm169_vm1, 1.0, %v602_v33 }
 0x132   :  { %v175_v57 = vmul.f32 0.3275911, %v173_v55  ;;  %v205_v2 = vsub.f32 0.0, %v173_v55 }
 0x133   :  { %v178_v58 = vadd.f32 1.0, %v176_v56  ;;  %v208_v5 = vmul.f32 %v206_v63, %v174_v54 }
 0x134   :  { %v177_v59 = vadd.f32 1.0, %v175_v57  ;;  %v207_v8 = vmul.f32 %v205_v2, %v173_v55 }
 0x135   :  { %495 = vrcp.f32 %v178_v58  ;;  %v211_v11 = vmul.f32 1.442695, %v208_v5 }
 0x136   :  { %497 = vrcp.f32 %v177_v59  ;;  %v209_v14 = vmul.f32 1.442695, %v207_v8 }
 0x137   :  { %499 = vpow2.f32 %v211_v11 }
 0x138   :  { %501 = vpow2.f32 %v209_v14 }
 0x13f   :  { %v496_v60 = vpop.eup %495 }
 0x140   :  { %v498_v61 = vpop.eup %497  ;;  %v182_v62 = vmul.f32 %v496_v60, %v178_v58 }
 0x141   :  { %v181_v0 = vmul.f32 %v498_v61, %v177_v59  ;;  %v500_v27 = vpop.eup %499 }
 0x142   :  { %v184_v1 = vsub.f32 2.0, %v182_v62  ;;  %v502_v29 = vpop.eup %501 }
 0x143   :  { %v183_v3 = vsub.f32 2.0, %v181_v0 }
 0x144   :  { %v186_v4 = vmul.f32 %v496_v60, %v184_v1 }
 0x145   :  { %v185_v6 = vmul.f32 %v498_v61, %v183_v3 }
 0x146   :  { %v188_v7 = vmul.f32 1.0614054, %v186_v4 }
 0x147   :  { %v187_v9 = vmul.f32 1.0614054, %v185_v6 }
 0x148   :  { %v190_v10 = vadd.f32 -1.4531521, %v188_v7 }
 0x149   :  { %v189_v12 = vadd.f32 -1.4531521, %v187_v9 }
 0x14a   :  { %v192_v13 = vmul.f32 %v190_v10, %v186_v4 }
 0x14b   :  { %v191_v15 = vmul.f32 %v189_v12, %v185_v6 }
 0x14c   :  { %v194_v16 = vadd.f32 1.4214138, %v192_v13 }
 0x14d   :  { %v193_v17 = vadd.f32 1.4214138, %v191_v15 }
 0x14e   :  { %v196_v18 = vmul.f32 %v194_v16, %v186_v4 }
 0x14f   :  { %v195_v19 = vmul.f32 %v193_v17, %v185_v6 }
 0x150   :  { %v198_v20 = vadd.f32 -0.28449672, %v196_v18 }
 0x151   :  { %v197_v21 = vadd.f32 -0.28449672, %v195_v19 }
 0x152   :  { %v200_v22 = vmul.f32 %v198_v20, %v186_v4 }
 0x153   :  { %v199_v23 = vmul.f32 %v197_v21, %v185_v6 }
 0x154   :  { %v202_v24 = vadd.f32 0.2548296, %v200_v22 }
 0x155   :  { %v201_v25 = vadd.f32 0.2548296, %v199_v23 }
 0x156   :  { %v204_v26 = vmul.f32 %v202_v24, %v186_v4 }
 0x157   :  { %v203_v28 = vmul.f32 %v201_v25, %v185_v6 }
 0x158   :  { %v214_v30 = vmul.f32 %v500_v27, %v204_v26 }
 0x159   :  { %v213_v31 = vmul.f32 %v502_v29, %v203_v28 }
 0x15a   :  { %v216_v32 = vsub.f32 1.0, %v214_v30 }
 0x15b   :  { %v215_v35 = vsub.f32 1.0, %v213_v31 }
 0x15c   :  { %v218_v36 = vmul.f32 %v216_v32, %v172_v34 }
 0x15d   :  { %v217_v38 = vmul.f32 %v215_v35, %v171_v37 }
 0x15e   :  { %v220_v39 = vadd.f32 1.0, %v218_v36 }
 0x15f   :  { %v219_v41 = vadd.f32 1.0, %v217_v38 }
 0x160   :  { %v222_v44 = vmul.f32 %v220_v39, %v166_v42 }
 0x161   :  { %v221_v43 = vmul.f32 %v219_v41, %v165_v40 }
 0x163   :  { %421 = vmatprep.mubr.f32.mxu1 %v221_v43 }
 0x164   :  { %422 = vmatmul.mubr.f32.vlgmr.msra.gmra.mrb[0].mxu1 %v222_v44 }
 0x237   :  { %v423_v45 = vpop.f32.mrb[0].mxu1 }
 0x238   :  { %299 = vst [vmem:[#allocation8 + $0x8] sm:$0xff] %v423_v45  ;;  %v289_v46 = vpop.f32.mrb[1].mxu1 }
 0x239   :  { %298 = vst [vmem:[#allocation8] sm:$0xff] %v289_v46 }
 0x23a   :  { %580 = shalt.err (!%p577_p0)
}
 0x23b   :  { %s581_s27 = scalar_lea.hbm %s694_s3, 256 }
 0x23c   :  { %p582_p1 = scmp.ne.s32.totalorder %s694_s3, %s581_s27  ;;  %p585_p2 = scmp.lt.u32.totalorder %s581_s27, %s694_s3 }
 0x23e   :  { %p587_p3 = pnand %p585_p2, %p582_p1 }
 0x240   :  { %590 = shalt.err (!%p587_p3)
}
 0x241   :  { %311 = dma.vmem_to_hbm [thread:$0]  %s306_s21, 256, %s694_s3, [#allocation4], %s599_s24, %s599_s24, %s600_s25  }
 0x242   :  { %595 = dma.done.wait [#allocation4], 256  }
 0x243   :  { %596 = vsyncadd [#allocation4], 4294967040 }
 0x244   :  { %315 = vsyncpa [#allocation3], 1 }
 0x245   :  { %316 = vsyncpa [#allocation6], 1 }
 0x246   :  { %317 = vsyncpa [#allocation4], 1 }

</bundles_post_ra>
